<compile_context>
chip_gen: v7x
topology: tpu7x:2x2x1
jax: 0.10.0
libtpu: 0.0.40
codegen_flags: <defaults>
</compile_context>

<pallas_src>
import jax
import jax.numpy as jnp
from jax import lax
from jax.experimental import pallas as pl
from jax.experimental.pallas import tpu as pltpu

NUM_DEEP = 3
HID = 32

# Contract last dim of lhs with last dim of rhs: y = x @ W.T  (W is (out, in)).
_DN = (((1,), (1,)), ((), ()))


def critic_kernel(x_ref,
                  w0_ref, b0_ref,
                  w1_ref, b1_ref,
                  w2_ref, b2_ref,
                  w3_ref, b3_ref,
                  wo_ref, bo_ref,
                  out_ref):
    # In-kernel f32 -> bf16 pack of the input row (co-issues on the VPU slot).
    xb = x_ref[...].astype(jnp.bfloat16)

    # fc0: bf16 x / bf16 W0 on the MXU, f32 accumulate; bias add in f32.
    t = lax.dot_general(xb, w0_ref[...], _DN,
                        preferred_element_type=jnp.float32) + b0_ref[...]

    # Three hidden layers: relu(Linear(t)); dropout == identity in eval mode.
    # bf16 operands -> single-pass MXU matmuls; bias add + ReLU stay in f32.
    for w_ref, b_ref in ((w1_ref, b1_ref), (w2_ref, b2_ref), (w3_ref, b3_ref)):
        t = lax.dot_general(t.astype(jnp.bfloat16), w_ref[...], _DN,
                            preferred_element_type=jnp.float32) + b_ref[...]
        t = jnp.maximum(t, 0.0)

    # out: K=32, N=1 matvec -> VPU multiply + lane reduce (skips the MXU
    # weight-push / pop round trip).  Scalar bias comes from SMEM.
    out_ref[...] = (jnp.sum(t * wo_ref[...], axis=-1, keepdims=True)
                    + bo_ref[0, 0])


def prepare_params(params):
    """One-time, outside-the-forward param prep.

    Keeps native nn.Linear (out, in) layout (no transposes).  W0..W3 are cast
    to bf16 once (single-pass MXU; f32 accumulation happens in-kernel).
    Biases are reshaped to (1, out) f32 rows; the scalar output bias becomes a
    (1, 1) f32 array destined for SMEM.
    """
    (w0, b0), (w1, b1), (w2, b2), (w3, b3), (wo, bo) = params
    return (
        w0.astype(jnp.bfloat16), b0.reshape(1, -1).astype(jnp.float32),
        w1.astype(jnp.bfloat16), b1.reshape(1, -1).astype(jnp.float32),
        w2.astype(jnp.bfloat16), b2.reshape(1, -1).astype(jnp.float32),
        w3.astype(jnp.bfloat16), b3.reshape(1, -1).astype(jnp.float32),
        wo.astype(jnp.float32),  bo.reshape(1, 1).astype(jnp.float32),
    )


@jax.jit
def critic_forward(x, prepared):
    """x: any-shaped tensor; flattened to (1, -1) like the PyTorch module."""
    sizein = prepared[0].shape[1]
    if x.size != sizein:
        raise ValueError(
            f"Critic expects {sizein} input features, got x.size={x.size} "
            f"for input shape {x.shape}")

    # Layout-only reshape; the bf16 cast happens inside the kernel.
    t = x.reshape(1, -1)

    vmem = pl.BlockSpec(memory_space=pltpu.MemorySpace.VMEM)
    smem = pl.BlockSpec(memory_space=pltpu.MemorySpace.SMEM)
    # One spec per positional input (x + 10 params); only the scalar output
    # bias -- the LAST positional input -- lives in SMEM.
    in_specs = [vmem] * (1 + len(prepared))
    in_specs[-1] = smem

    return pl.pallas_call(
        critic_kernel,
        out_shape=jax.ShapeDtypeStruct((1, 1), jnp.float32),
        # Grid-less call: whole arrays resident in VMEM, no pipeline overhead.
        in_specs=in_specs,
        out_specs=vmem,
    )(t, *prepared)


def init_params(key, sizein, hid=HID, num_deep=NUM_DEEP):
    """Deterministic synthetic init matching nn.Linear shapes: W (out, in), b (out,)."""
    params = []
    dims = [(hid, sizein)] + [(hid, hid)] * num_deep + [(1, hid)]
    for (out_f, in_f) in dims:
        key, kw, kb = jax.random.split(key, 3)
        bound = 1.0 / jnp.sqrt(in_f)
        w = jax.random.uniform(kw, (out_f, in_f), jnp.float32, -bound, bound)
        b = jax.random.uniform(kb, (out_f,), jnp.float32, -bound, bound)
        params.append((w, b))
    return params


def critic_reference(x, params):
    """Pure-JAX reference mirroring the kernel's numerics (bf16 MXU operands,
    f32 accumulation / bias / ReLU, f32 VPU-reduce output layer)."""
    (w0, b0), (w1, b1), (w2, b2), (w3, b3), (wo, bo) = params

    def bf(a):  # bf16 round trip: same quantization the kernel's MXU operands see
        return a.astype(jnp.bfloat16).astype(jnp.float32)

    hi = lax.Precision.HIGHEST
    t = x.reshape(1, -1).astype(jnp.float32)
    t = jnp.dot(bf(t), bf(w0).T, precision=hi) + b0
    for w, b in ((w1, b1), (w2, b2), (w3, b3)):
        t = jnp.maximum(jnp.dot(bf(t), bf(w).T, precision=hi) + b, 0.0)
    return jnp.sum(t * wo, axis=-1, keepdims=True) + bo


if __name__ == "__main__":
    key = jax.random.PRNGKey(0)
    kx, kp = jax.random.split(key)

    # Example input consistent with a flattened feature tensor: (2, 4, 16, 16)
    x = jax.random.normal(kx, (2, 4, 16, 16), jnp.float32)
    sizein = int(x.size)  # 2048

    params = init_params(kp, sizein)
    prepared = prepare_params(params)   # one-time prep, outside the forward

    out = critic_forward(x, prepared)
    out = jax.block_until_ready(out)

    ref = critic_reference(x, params)
    assert out.shape == (1, 1)
    assert jnp.allclose(out, ref, atol=1e-3, rtol=1e-3), (out, ref)

    print("KERNEL_OK")
</pallas_src>

<mosaic_0001>
module attributes {stable_mosaic.version = 11 : i64} {
  func.func @critic_kernel(%arg0: memref<1x2048xf32, #tpu.memory_space<vmem>>, %arg1: memref<32x2048xbf16, #tpu.memory_space<vmem>>, %arg2: memref<1x32xf32, #tpu.memory_space<vmem>>, %arg3: memref<32x32xbf16, #tpu.memory_space<vmem>>, %arg4: memref<1x32xf32, #tpu.memory_space<vmem>>, %arg5: memref<32x32xbf16, #tpu.memory_space<vmem>>, %arg6: memref<1x32xf32, #tpu.memory_space<vmem>>, %arg7: memref<32x32xbf16, #tpu.memory_space<vmem>>, %arg8: memref<1x32xf32, #tpu.memory_space<vmem>>, %arg9: memref<1x32xf32, #tpu.memory_space<vmem>>, %arg10: memref<1x1xf32, #tpu.memory_space<smem>>, %arg11: memref<1x1xf32, #tpu.memory_space<vmem>>) attributes {dimension_semantics = [], scalar_prefetch = 0 : i64, scratch_operands = 0 : i64, tpu.core_type = #tpu.core_type<tc>} {
    %c0 = arith.constant 0 : index
    %c0_0 = arith.constant 0 : index
    %0 = vector.load %arg0[%c0, %c0_0] : memref<1x2048xf32, #tpu.memory_space<vmem>>, vector<1x2048xf32>
    %1 = arith.truncf %0 : vector<1x2048xf32> to vector<1x2048xbf16>
    %c0_1 = arith.constant 0 : index
    %c0_2 = arith.constant 0 : index
    %2 = vector.load %arg1[%c0_1, %c0_2] : memref<32x2048xbf16, #tpu.memory_space<vmem>>, vector<32x2048xbf16>
    %cst = arith.constant dense<0.000000e+00> : vector<1x32xf32>
    %3 = tpu.matmul %1, %2, %cst {dimension_numbers = #tpu.dot_dimension_numbers<[1], [1], [0], [0], [0, 0, 1, 0], [], []>} : vector<1x2048xbf16>, vector<32x2048xbf16>, vector<1x32xf32> -> vector<1x32xf32>
    %c0_3 = arith.constant 0 : index
    %c0_4 = arith.constant 0 : index
    %4 = vector.load %arg2[%c0_3, %c0_4] : memref<1x32xf32, #tpu.memory_space<vmem>>, vector<1x32xf32>
    %5 = arith.addf %3, %4 : vector<1x32xf32>
    %6 = arith.truncf %5 : vector<1x32xf32> to vector<1x32xbf16>
    %c0_5 = arith.constant 0 : index
    %c0_6 = arith.constant 0 : index
    %7 = vector.load %arg3[%c0_5, %c0_6] : memref<32x32xbf16, #tpu.memory_space<vmem>>, vector<32x32xbf16>
    %cst_7 = arith.constant dense<0.000000e+00> : vector<1x32xf32>
    %8 = tpu.matmul %6, %7, %cst_7 {dimension_numbers = #tpu.dot_dimension_numbers<[1], [1], [0], [0], [0, 0, 1, 0], [], []>} : vector<1x32xbf16>, vector<32x32xbf16>, vector<1x32xf32> -> vector<1x32xf32>
    %c0_8 = arith.constant 0 : index
    %c0_9 = arith.constant 0 : index
    %9 = vector.load %arg4[%c0_8, %c0_9] : memref<1x32xf32, #tpu.memory_space<vmem>>, vector<1x32xf32>
    %10 = arith.addf %8, %9 : vector<1x32xf32>
    %cst_10 = arith.constant 0.000000e+00 : f32
    %11 = vector.broadcast %cst_10 : f32 to vector<1x32xf32>
    %12 = arith.maximumf %10, %11 : vector<1x32xf32>
    %13 = arith.truncf %12 : vector<1x32xf32> to vector<1x32xbf16>
    %c0_11 = arith.constant 0 : index
    %c0_12 = arith.constant 0 : index
    %14 = vector.load %arg5[%c0_11, %c0_12] : memref<32x32xbf16, #tpu.memory_space<vmem>>, vector<32x32xbf16>
    %cst_13 = arith.constant dense<0.000000e+00> : vector<1x32xf32>
    %15 = tpu.matmul %13, %14, %cst_13 {dimension_numbers = #tpu.dot_dimension_numbers<[1], [1], [0], [0], [0, 0, 1, 0], [], []>} : vector<1x32xbf16>, vector<32x32xbf16>, vector<1x32xf32> -> vector<1x32xf32>
    %c0_14 = arith.constant 0 : index
    %c0_15 = arith.constant 0 : index
    %16 = vector.load %arg6[%c0_14, %c0_15] : memref<1x32xf32, #tpu.memory_space<vmem>>, vector<1x32xf32>
    %17 = arith.addf %15, %16 : vector<1x32xf32>
    %cst_16 = arith.constant 0.000000e+00 : f32
    %18 = vector.broadcast %cst_16 : f32 to vector<1x32xf32>
    %19 = arith.maximumf %17, %18 : vector<1x32xf32>
    %20 = arith.truncf %19 : vector<1x32xf32> to vector<1x32xbf16>
    %c0_17 = arith.constant 0 : index
    %c0_18 = arith.constant 0 : index
    %21 = vector.load %arg7[%c0_17, %c0_18] : memref<32x32xbf16, #tpu.memory_space<vmem>>, vector<32x32xbf16>
    %cst_19 = arith.constant dense<0.000000e+00> : vector<1x32xf32>
    %22 = tpu.matmul %20, %21, %cst_19 {dimension_numbers = #tpu.dot_dimension_numbers<[1], [1], [0], [0], [0, 0, 1, 0], [], []>} : vector<1x32xbf16>, vector<32x32xbf16>, vector<1x32xf32> -> vector<1x32xf32>
    %c0_20 = arith.constant 0 : index
    %c0_21 = arith.constant 0 : index
    %23 = vector.load %arg8[%c0_20, %c0_21] : memref<1x32xf32, #tpu.memory_space<vmem>>, vector<1x32xf32>
    %24 = arith.addf %22, %23 : vector<1x32xf32>
    %cst_22 = arith.constant 0.000000e+00 : f32
    %25 = vector.broadcast %cst_22 : f32 to vector<1x32xf32>
    %26 = arith.maximumf %24, %25 : vector<1x32xf32>
    %c0_23 = arith.constant 0 : index
    %c0_24 = arith.constant 0 : index
    %27 = vector.load %arg9[%c0_23, %c0_24] : memref<1x32xf32, #tpu.memory_space<vmem>>, vector<1x32xf32>
    %28 = arith.mulf %26, %27 : vector<1x32xf32>
    %cst_25 = arith.constant dense<0.000000e+00> : vector<1xf32>
    %29 = vector.multi_reduction <add>, %28, %cst_25 [1] : vector<1x32xf32> to vector<1xf32>
    %30 = vector.shape_cast %29 : vector<1xf32> to vector<1x1xf32>
    %c0_26 = arith.constant 0 : index
    %c0_27 = arith.constant 0 : index
    %31 = memref.load %arg10[%c0_26, %c0_27] : memref<1x1xf32, #tpu.memory_space<smem>>
    %32 = vector.broadcast %31 : f32 to vector<1x1xf32>
    %33 = arith.addf %30, %32 : vector<1x1xf32>
    %c0_28 = arith.constant 0 : index
    %c0_29 = arith.constant 0 : index
    %34 = vector.load %arg11[%c0_28, %c0_29] : memref<1x1xf32, #tpu.memory_space<vmem>>, vector<1x1xf32>
    tpu.vector_store %arg11[%c0_28, %c0_29], %33 {strides = array<i32>} : memref<1x1xf32, #tpu.memory_space<vmem>>, vector<1x1xf32>,
    return
  }
}

</mosaic_0001>

<bundles_post_ra>
// kernel: critic_forward.1
= control target key start
LH: loop header
LB: loop body
LE: loop exit
PB: predicated region body
PF: predicated region fallthrough
CT: control target
= control target key end

     0   :  { %17 = vsyncpa [#allocation4], 0  ;;  %s1247_s0 = inlined_call_operand.vmem [shape: f32[1,2048], index: 0, kind: input, shape index: {}]   ;;  %s1248_s1 = inlined_call_operand.hbm [shape: bf16[32,2048], index: 1, kind: input, shape index: {}]   ;;  %s1249_s2 = inlined_call_operand.vmem [shape: f32[1,32], index: 2, kind: input, shape index: {}]   ;;  %s1250_s3 = inlined_call_operand.vmem [shape: bf16[32,32], index: 3, kind: input, shape index: {}]   ;;  %s1251_s4 = inlined_call_operand.vmem [shape: f32[1,32], index: 4, kind: input, shape index: {}]   ;;  %s1252_s5 = inlined_call_operand.vmem [shape: bf16[32,32], index: 5, kind: input, shape index: {}]   ;;  %s1253_s6 = inlined_call_operand.vmem [shape: f32[1,32], index: 6, kind: input, shape index: {}]   ;;  %s1254_s7 = inlined_call_operand.vmem [shape: bf16[32,32], index: 7, kind: input, shape index: {}]   ;;  %s1255_s8 = inlined_call_operand.vmem [shape: f32[1,32], index: 8, kind: input, shape index: {}]   ;;  %s1256_s9 = inlined_call_operand.vmem [shape: f32[1,32], index: 9, kind: input, shape index: {}]   ;;  %s1257_s10 = inlined_call_operand.<no memory space> [shape: f32[1,1], index: 10, kind: input, shape index: {}]   ;;  %s1258_s11 = inlined_call_operand.hbm [shape: f32[1,1], index: 11, kind: output, shape index: {}]  }
   0x1   :  { %18 = vsyncpa [#allocation5], 0  ;;  %s1053_s17 = smov [#allocation3]   ;;  %s1005_s21 = scalar_lea.hbm %s1248_s1, 4096 }
   0x2   :  { %s26_s18 = sshll.u32 %s1053_s17, 4  ;;  %p1006_p0 = scmp.ne.s32.totalorder %s1248_s1, %s1005_s21  ;;  %s27_s18 = int_to_ptr.vmem [resolvable:$true] %s26_s18 }
   0x3   :  { %p1009_p1 = scmp.lt.u32.totalorder %s1005_s21, %s1248_s1 }
   0x5   :  { %p1011_p2 = pnand %p1009_p1, %p1006_p0 }
   0x7   :  { %1014 = shalt.err (!%p1011_p2)
}
   0x8   :  { %s1015_s26 = scalar_lea.vmem %s27_s18, 4096  ;;  %p1020_p4 = scmp.lt.s32.totalorder %s27_s18, %s27_s18 }
   0x9   :  { %p1016_p3 = scmp.ne.s32.totalorder %s27_s18, %s1015_s26  ;;  %p1021_p5 = scmp.lt.s32.totalorder %s1015_s26, %s1015_s26 }
   0xb   :  { %p1022_p6 = por %p1021_p5, %p1020_p4 }
   0xd   :  { %p1023_p7 = pnand %p1022_p6, %p1016_p3 }
   0xf   :  { %1026 = shalt.err (!%p1023_p7)
}
  0x10   :  { %s1054_s27 = smov 1024   ;;  %s1055_s28 = smov 64  }
  0x11   :  { %32 = dma.hbm_to_vmem [thread:$0]  %s1248_s1, 4096, %s27_s18, [#allocation4], %s1054_s27, %s1054_s27, %s1055_s28  }
  0x12   :  { %1049 = dma.done.wait [#allocation4], 4096  }
  0x13   :  { %1050 = vsyncadd [#allocation4], 4294963200  ;;  %v59_v0 = vlaneseq  ;;  %v157_v3 = vld [vmem:[#allocation3 + $0x10] sm:$0xff]  ;;  %v1137_v9 = vld [vmem:[%s1247_s0] sm:$0xff]  ;;  %vm684_vm0 = vcmask 261120   ;;  %vm1057_vm1 = vmmov 0  }
  0x14   :  { %v165_v4 = vld [vmem:[#allocation3 + $0x50] sm:$0xff]  ;;  %v155_v13 = vld [vmem:[#allocation3] sm:$0xff]  ;;  %v158_v15 = vld [vmem:[#allocation3 + $0x18] sm:$0xff]  ;;  %vm869_vm2 = vcmask 253952   ;;  %s1058_s13 = smov [#allocation6]   ;;  %vm876_vm3 = vcmask 0  }
  0x15   :  { %v1131_v1 = vshrl.u32 %v59_v0, 7  ;;  %v173_v5 = vld [vmem:[#allocation3 + $0x90] sm:$0xff]  ;;  %v898_v6 = vcombine.high %v157_v3, %v165_v4  ;;  %v897_v7 = vcombine.low %v157_v3, %v165_v4  ;;  %v163_v14 = vld [vmem:[#allocation3 + $0x40] sm:$0xff]  ;;  %v166_v16 = vld [vmem:[#allocation3 + $0x58] sm:$0xff] }
  0x16   :  { %v181_v8 = vld [vmem:[#allocation3 + $0xd0] sm:$0xff]  ;;  %v894_v17 = vcombine.high %v155_v13, %v163_v14  ;;  %v893_v18 = vcombine.low %v155_v13, %v163_v14  ;;  %v171_v19 = vld [vmem:[#allocation3 + $0x80] sm:$0xff]  ;;  %v900_v26 = vcombine.high %v158_v15, %v166_v16  ;;  %v156_v31 = vld [vmem:[#allocation3 + $0x8] sm:$0xff]  ;;  %v899_v40 = vcombine.low %v158_v15, %v166_v16 }
  0x17   :  { %v81_v2 = vsub.s32 5, %v1131_v1  ;;  %v914_v10 = vcombine.high %v173_v5, %v181_v8  ;;  %428 = vmatprep.subr.bf16.mxu0 %v898_v6  ;;  %v179_v20 = vld [vmem:[#allocation3 + $0xc0] sm:$0xff]  ;;  %v77_v21 = vsub.s32 4, %v1131_v1  ;;  %v65_v22 = vsub.s32 1, %v1131_v1  ;;  %v164_v32 = vld [vmem:[#allocation3 + $0x48] sm:$0xff]  ;;  %v174_v33 = vld [vmem:[#allocation3 + $0x98] sm:$0xff] }
  0x18   :  { %429 = vmatpush1.bf16.xpose.msra.mxu0 %v897_v7  ;;  %v913_v23 = vcombine.low %v173_v5, %v181_v8  ;;  %v89_v24 = vsub.s32 7, %v1131_v1  ;;  %348 = vmatprep.subr.bf16.mxu1 %v894_v17  ;;  %v910_v25 = vcombine.high %v171_v19, %v179_v20  ;;  %v61_v29 = vsub.s32 0, %v1131_v1  ;;  %v182_v34 = vld [vmem:[#allocation3 + $0xd8] sm:$0xff]  ;;  %v172_v45 = vld [vmem:[#allocation3 + $0x88] sm:$0xff]  ;;  %v159_v50 = vld [vmem:[#allocation3 + $0x20] sm:$0xff] }
  0x19   :  { %v82_v11 = vrot.slane %v1137_v9, %v81_v2  ;;  %430 = vmatprep.subr.bf16.mxu0 %v914_v10  ;;  %349 = vmatpush1.bf16.xpose.msra.mxu1 %v893_v18  ;;  %v66_v27 = vrot.slane %v1137_v9, %v65_v22  ;;  %v78_v28 = vrot.slane %v1137_v9, %v77_v21  ;;  %v73_v39 = vsub.s32 3, %v1131_v1  ;;  %v180_v46 = vld [vmem:[#allocation3 + $0xc8] sm:$0xff]  ;;  %v167_v51 = vld [vmem:[#allocation3 + $0x60] sm:$0xff] }
  0x1a   :  { %350 = vmatprep.subr.bf16.mxu1 %v910_v25  ;;  %v90_v35 = vrot.slane %v1137_v9, %v89_v24  ;;  %v909_v36 = vcombine.low %v171_v19, %v179_v20  ;;  %v896_v37 = vcombine.high %v156_v31, %v164_v32  ;;  %v62_v42 = vrot.slane %v1137_v9, %v61_v29  ;;  %v1162_v56 = vld [vmem:[%s1247_s0 + $0x8] sm:$0xff]  ;;  %v175_v60 = vld [vmem:[#allocation3 + $0xa0] sm:$0xff]  ;;  %v161_v19 = vld [vmem:[#allocation3 + $0x30] sm:$0xff] }
  0x1b   :  { %v144_v12 = vpack.c.bf16 %v82_v11, %v82_v11  ;;  %v140_v30 = vpack.c.bf16 %v66_v27, %v66_v27  ;;  %v143_v38 = vpack.c.bf16 %v78_v28, %v78_v28  ;;  %v916_v43 = vcombine.high %v174_v33, %v182_v34  ;;  %v183_v61 = vld [vmem:[#allocation3 + $0xe0] sm:$0xff]  ;;  %v160_v7 = vld [vmem:[#allocation3 + $0x28] sm:$0xff]  ;;  %v169_v20 = vld [vmem:[#allocation3 + $0x70] sm:$0xff] }
  0x1c   :  { %v146_v41 = vpack.c.bf16 %v90_v35, %v90_v35  ;;  %v74_v44 = vrot.slane %v1137_v9, %v73_v39  ;;  %v139_v47 = vpack.c.bf16 %v62_v42, %v62_v42  ;;  %v895_v48 = vcombine.low %v156_v31, %v164_v32  ;;  %v168_v8 = vld [vmem:[#allocation3 + $0x68] sm:$0xff]  ;;  %v177_v27 = vld [vmem:[#allocation3 + $0xb0] sm:$0xff] }
  0x1d   :  { %460 = vmatprep.mubr.bf16.mxu0 %v144_v12  ;;  %380 = vmatprep.mubr.bf16.mxu1 %v140_v30  ;;  %v912_v52 = vcombine.high %v172_v45, %v180_v46  ;;  %v85_v53 = vsub.s32 6, %v1131_v1  ;;  %v915_v54 = vcombine.low %v174_v33, %v182_v34  ;;  %v902_v55 = vcombine.high %v159_v50, %v167_v51  ;;  %v184_v14 = vld [vmem:[#allocation3 + $0xe8] sm:$0xff]  ;;  %v185_v28 = vld [vmem:[#allocation3 + $0xf0] sm:$0xff]  ;;  %v162_v33 = vld [vmem:[#allocation3 + $0x38] sm:$0xff] }
  0x1e   :  { %v142_v49 = vpack.c.bf16 %v74_v44, %v74_v44  ;;  %v98_v58 = vrot.slane %v1162_v56, %v65_v22  ;;  %v911_v59 = vcombine.low %v172_v45, %v180_v46  ;;  %v69_v62 = vsub.s32 2, %v1131_v1  ;;  %v170_v34 = vld [vmem:[#allocation3 + $0x78] sm:$0xff]  ;;  %v1000_v1 = vld [vmem:[%s1250_s3 + $0x8] sm:$0xff]  }
  0x1f   :  { %v86_v57 = vrot.slane %v1137_v9, %v85_v53  ;;  %v901_v0 = vcombine.low %v159_v50, %v167_v51  ;;  %v918_v5 = vcombine.high %v175_v60, %v183_v61  ;;  %v917_v10 = vcombine.low %v175_v60, %v183_v61 }
  0x20   :  { %431 = vmatpush1.bf16.xpose.msra.mxu0 %v913_v23  ;;  %v148_v3 = vpack.c.bf16 %v98_v58, %v98_v58  ;;  %v70_v4 = vrot.slane %v1137_v9, %v69_v62  ;;  %v904_v11 = vcombine.high %v160_v7, %v168_v8  ;;  %v94_v12 = vrot.slane %v1162_v56, %v61_v29  ;;  %v176_v9 = vld [vmem:[#allocation3 + $0xa8] sm:$0xff] }
  0x21   :  { %468 = vmatprep.subr.bf16.mxu0 %v900_v26  ;;  %351 = vmatpush1.bf16.xpose.msra.mxu1 %v909_v36  ;;  %v145_v63 = vpack.c.bf16 %v86_v57, %v86_v57  ;;  %v106_v13 = vrot.slane %v1162_v56, %v73_v39  ;;  %v903_v16 = vcombine.low %v160_v7, %v168_v8  ;;  %v186_v39 = vld [vmem:[#allocation3 + $0xf8] sm:$0xff]  ;;  %v1056_v46 = vmov 0.0   ;;  %v1003_v7 = vld [vmem:[%s1254_s7] sm:$0xff]  }
  0x22   :  { %388 = vmatprep.subr.bf16.mxu1 %v896_v37  ;;  %v141_v6 = vpack.c.bf16 %v70_v4, %v70_v4  ;;  %v147_v15 = vpack.c.bf16 %v94_v12, %v94_v12  ;;  %v920_v18 = vcombine.high %v176_v9, %v184_v14  ;;  %v919_v22 = vcombine.low %v176_v9, %v184_v14  ;;  %v1004_v9 = vld [vmem:[%s1254_s7 + $0x8] sm:$0xff]  }
  0x23   :  { %v150_v17 = vpack.c.bf16 %v106_v13, %v106_v13  ;;  %v906_v23 = vcombine.high %v161_v19, %v169_v20  ;;  %v102_v25 = vrot.slane %v1162_v56, %v69_v62  ;;  %v114_v26 = vrot.slane %v1162_v56, %v81_v2 }
  0x24   :  { %v905_v30 = vcombine.low %v161_v19, %v169_v20  ;;  %v922_v32 = vcombine.high %v177_v27, %v185_v28  ;;  %v921_v35 = vcombine.low %v177_v27, %v185_v28  ;;  %v908_v36 = vcombine.high %v162_v33, %v170_v34 }
  0x25   :  { %v149_v29 = vpack.c.bf16 %v102_v25, %v102_v25  ;;  %v152_v31 = vpack.c.bf16 %v114_v26, %v114_v26  ;;  %v110_v37 = vrot.slane %v1162_v56, %v77_v21  ;;  %v122_v2 = vrot.slane %v1162_v56, %v89_v24  ;;  %v999_v24 = vld [vmem:[%s1250_s3] sm:$0xff]  }
  0x26   :  { %v118_v21 = vrot.slane %v1162_v56, %v85_v53  ;;  %v187_v53 = vld [vmem:[%s1249_s2] sm:$0x1]  ;;  %v821_v13 = vsel %vm684_vm0, %v1003_v7, 0  ;;  %v824_v14 = vsel %vm684_vm0, %v1004_v9, 0 }
  0x27   :  { %461 = vmatmul.mubr.bf16.vlgmr.msra.gmra.mrb[0].mxu0 %v143_v38  ;;  %v178_v38 = vld [vmem:[#allocation3 + $0xb8] sm:$0xff]  ;;  %v154_v42 = vpack.c.bf16 %v122_v2, %v122_v2  ;;  %v806_v25 = vld [vmem:[%s1255_s8] sm:$0x1]  ;;  %s884_s8 = sshll.u32 %s1058_s13, 4  ;;  %s885_s8 = int_to_ptr.vmem [resolvable:$true] %s884_s8 }
  0x28   :  { %469 = vmatpush1.bf16.xpose.msra.mxu0 %v899_v40  ;;  %500 = vmatprep.mubr.bf16.mxu0 %v146_v41  ;;  %v151_v40 = vpack.c.bf16 %v110_v37, %v110_v37  ;;  %v907_v41 = vcombine.low %v162_v33, %v170_v34  ;;  %v923_v44 = vcombine.low %v178_v38, %v186_v39  ;;  %s1027_s1 = scalar_lea.vmem %s885_s8, 16  ;;  %p1032_p9 = scmp.lt.s32.totalorder %s885_s8, %s885_s8 }
  0x29   :  { %470 = vmatprep.subr.bf16.mxu0 %v916_v43  ;;  %381 = vmatmul.mubr.bf16.vlgmr.msra.gmra.mrb[0].mxu1 %v139_v47  ;;  %v924_v43 = vcombine.high %v178_v38, %v186_v39  ;;  %v153_v45 = vpack.c.bf16 %v118_v21, %v118_v21  ;;  %v689_v47 = vsel %vm684_vm0, %v999_v24, 0  ;;  %p1028_p8 = scmp.ne.s32.totalorder %s885_s8, %s1027_s1 }
  0x2a   :  { %389 = vmatpush1.bf16.xpose.msra.mxu1 %v895_v48  ;;  %420 = vmatprep.mubr.bf16.mxu1 %v142_v49  ;;  %v692_v48 = vsel %vm684_vm0, %v1000_v1, 0 }
  0x2b   :  { %390 = vmatprep.subr.bf16.mxu1 %v912_v52 }
  0x30   :  { %471 = vmatpush1.bf16.xpose.msra.mxu0 %v915_v54 }
  0x31   :  { %508 = vmatprep.subr.bf16.mxu0 %v902_v55  ;;  %v1001_v55 = vld [vmem:[%s1252_s5] sm:$0xff]  }
  0x32   :  { %391 = vmatpush1.bf16.xpose.msra.mxu1 %v911_v59  ;;  %v755_v62 = vsel %vm684_vm0, %v1001_v55, 0 }
  0x33   :  { %943 = vmatprep.subr.bf16.mxu1 %v1056_v46 }
  0x37   :  { %501 = vmatmul.mubr.bf16.vlgmr.msra.gmra.mrb[0].mxu0 %v145_v63  ;;  %v1002_v63 = vld [vmem:[%s1252_s5 + $0x8] sm:$0xff]  }
  0x38   :  { %509 = vmatpush1.bf16.xpose.msra.mxu0 %v901_v0  ;;  %540 = vmatprep.mubr.bf16.mxu0 %v148_v3  ;;  %v758_v0 = vsel %vm684_vm0, %v1002_v63, 0  ;;  %v673_v3 = vld [vmem:[%s1251_s4] sm:$0x1] }
  0x39   :  { %510 = vmatprep.subr.bf16.mxu0 %v918_v5  ;;  %421 = vmatmul.mubr.bf16.vlgmr.msra.gmra.mrb[0].mxu1 %v141_v6 }
  0x3a   :  { %944 = vmatpush3.bf16.xpose.msra.mxu1 %v689_v47  ;;  %947 = vmatprep.mubr.msk.bf16.mxu1 %vm1057_vm1, %v1056_v46 }
  0x3b   :  { %945 = vmatprep.subr.bf16.mxu1 %v1056_v46 }
  0x40   :  { %511 = vmatpush1.bf16.xpose.msra.mxu0 %v917_v10 }
  0x41   :  { %548 = vmatprep.subr.bf16.mxu0 %v904_v11 }
  0x42   :  { %946 = vmatpush3.bf16.xpose.msra.mxu1 %v692_v48 }
  0x43   :  { %951 = vmatprep.subr.bf16.mxu1 %v1056_v46 }
  0x47   :  { %541 = vmatmul.mubr.bf16.vlgmr.msra.gmra.mrb[0].mxu0 %v147_v15  ;;  %v740_v15 = vld [vmem:[%s1253_s6] sm:$0x1] }
  0x48   :  { %549 = vmatpush1.bf16.xpose.msra.mxu0 %v903_v16  ;;  %580 = vmatprep.mubr.bf16.mxu0 %v150_v17 }
  0x49   :  { %550 = vmatprep.subr.bf16.mxu0 %v920_v18 }
  0x50   :  { %551 = vmatpush1.bf16.xpose.msra.mxu0 %v919_v22 }
  0x51   :  { %588 = vmatprep.subr.bf16.mxu0 %v906_v23 }
  0x57   :  { %581 = vmatmul.mubr.bf16.vlgmr.msra.gmra.mrb[0].mxu0 %v149_v29 }
  0x58   :  { %589 = vmatpush1.bf16.xpose.msra.mxu0 %v905_v30  ;;  %620 = vmatprep.mubr.bf16.mxu0 %v152_v31  ;;  %v867_v30 = vld [vmem:[%s1256_s9] sm:$0x1]  ;;  %s1031_s9 = scalar_lea.vmem %s885_s8, 32 }
  0x59   :  { %590 = vmatprep.subr.bf16.mxu0 %v922_v32  ;;  %p1033_p10 = scmp.lt.s32.totalorder %s1031_s9, %s1027_s1 }
  0x5b   :  { %p1034_p11 = por %p1033_p10, %p1032_p9 }
  0x5d   :  { %p1035_p12 = pnand %p1034_p11, %p1028_p8 }
  0x60   :  { %591 = vmatpush1.bf16.xpose.msra.mxu0 %v921_v35  ;;  %v874_v35 = vstv %s1257_s10 }
  0x61   :  { %628 = vmatprep.subr.bf16.mxu0 %v908_v36 }
  0x67   :  { %621 = vmatmul.mubr.bf16.vlgmr.msra.gmra.mrb[0].mxu0 %v151_v40 }
  0x68   :  { %629 = vmatpush1.bf16.xpose.msra.mxu0 %v907_v41  ;;  %660 = vmatprep.mubr.bf16.mxu0 %v154_v42 }
  0x69   :  { %630 = vmatprep.subr.bf16.mxu0 %v924_v43 }
  0x70   :  { %631 = vmatpush1.bf16.xpose.msra.mxu0 %v923_v44 }
  0x77   :  { %661 = vmatmul.mubr.bf16.vlgmr.msra.gmra.mrb[0].mxu0 %v153_v45 }
 0x10c   :  { %v422_v49 = vpop.f32.mrb[0].mxu1 }
 0x10d   :  { %v424_v50 = vpop.f32.mrb[1].mxu1  ;;  %v967_v54 = vadd.f32 %v422_v49, %v187_v53 }
 0x10e   :  { %v425_v51 = vpop.f32.mrb[2].mxu1 }
 0x10f   :  { %v426_v52 = vpop.f32.mrb[3].mxu1 }
 0x14a   :  { %v662_v56 = vpop.f32.mrb[0].mxu0 }
 0x14b   :  { %v968_v57 = vadd.f32 %v967_v54, %v662_v56  ;;  %v664_v58 = vpop.f32.mrb[1].mxu0 }
 0x14c   :  { %v665_v59 = vpop.f32.mrb[2].mxu0 }
 0x14d   :  { %v668_v60 = vpack.c.bf16 %v968_v57, %v968_v57  ;;  %v666_v61 = vpop.f32.mrb[3].mxu0 }
 0x14f   :  { %948 = vmatmul.mubr.msk.bf16.vlgmr.msra.gmra.mrb[4].mxu1 %vm684_vm0, %v668_v60 }
 0x150   :  { %952 = vmatpush3.bf16.xpose.msra.mxu1 %v755_v62  ;;  %955 = vmatprep.mubr.msk.bf16.mxu1 %vm1057_vm1, %v1056_v46 }
 0x151   :  { %953 = vmatprep.subr.bf16.mxu1 %v1056_v46 }
 0x158   :  { %954 = vmatpush3.bf16.xpose.msra.mxu1 %v758_v0 }
 0x159   :  { %959 = vmatprep.subr.bf16.mxu1 %v1056_v46 }
 0x222   :  { %v728_v4 = vpop.f32.mrb[4].mxu1 }
 0x223   :  { %v729_v5 = vadd.f32 %v728_v4, %v673_v3  ;;  %v949_v6 = vpop.f32.mrb[5].mxu1 }
 0x224   :  { %v731_v8 = vpop.f32.mrb[6].mxu1 }
 0x225   :  { %v734_v10 = vmax.f32 %v729_v5, 0.0  ;;  %v950_v11 = vpop.f32.mrb[7].mxu1 }
 0x227   :  { %v735_v12 = vpack.c.bf16 %v734_v10, %v734_v10 }
 0x229   :  { %956 = vmatmul.mubr.msk.bf16.vlgmr.msra.gmra.mrb[8].mxu1 %vm684_vm0, %v735_v12 }
 0x22a   :  { %960 = vmatpush3.bf16.xpose.msra.mxu1 %v821_v13  ;;  %963 = vmatprep.mubr.msk.bf16.mxu1 %vm1057_vm1, %v1056_v46 }
 0x22b   :  { %961 = vmatprep.subr.bf16.mxu1 %v1056_v46 }
 0x232   :  { %962 = vmatpush3.bf16.xpose.msra.mxu1 %v824_v14 }
 0x2fc   :  { %v794_v16 = vpop.f32.mrb[8].mxu1 }
 0x2fd   :  { %v795_v17 = vadd.f32 %v794_v16, %v740_v15  ;;  %v957_v18 = vpop.f32.mrb[9].mxu1 }
 0x2fe   :  { %v797_v19 = vpop.f32.mrb[10].mxu1 }
 0x2ff   :  { %v800_v20 = vmax.f32 %v795_v17, 0.0  ;;  %v958_v22 = vpop.f32.mrb[11].mxu1 }
 0x301   :  { %v801_v23 = vpack.c.bf16 %v800_v20, %v800_v20 }
 0x303   :  { %964 = vmatmul.mubr.msk.bf16.vlgmr.msra.gmra.mrb[12].mxu1 %vm684_vm0, %v801_v23 }
 0x3d6   :  { %v860_v26 = vpop.f32.mrb[12].mxu1 }
 0x3d7   :  { %v861_v27 = vadd.f32 %v860_v26, %v806_v25  ;;  %v965_v28 = vpop.f32.mrb[13].mxu1 }
 0x3d8   :  { %v863_v29 = vpop.f32.mrb[14].mxu1 }
 0x3d9   :  { %v866_v31 = vmax.f32 %v861_v27, 0.0  ;;  %v966_v32 = vpop.f32.mrb[15].mxu1 }
 0x3db   :  { %v868_v33 = vmul.f32 %v867_v30, %v866_v31 }
 0x3dd   :  { %v870_v34 = vsel %vm869_vm2, %v868_v33, 0.0 }
 0x3de   :  { %871 = vadd.xlane.f32.xlu0 %v870_v34 }
 0x46b   :  { %v872_v36 = vpop.xlane.xlu0 %871 }
 0x46c   :  { %v875_v37 = vadd.f32 %v874_v35, %v872_v36 }
 0x46e   :  { %877 = vst.msk [vmem:[#allocation6] sm:$0x1] %vm876_vm3, %v875_v37 }
 0x46f   :  { %1038 = shalt.err (!%p1035_p12)
}
 0x470   :  { %s1039_s15 = scalar_lea.hbm %s1258_s11, 16 }
 0x471   :  { %p1040_p13 = scmp.ne.s32.totalorder %s1258_s11, %s1039_s15  ;;  %p1043_p0 = scmp.lt.u32.totalorder %s1039_s15, %s1258_s11 }
 0x473   :  { %p1045_p1 = pnand %p1043_p0, %p1040_p13 }
 0x475   :  { %1048 = shalt.err (!%p1045_p1)
}
 0x476   :  { %887 = dma.vmem_to_hbm [thread:$0]  %s885_s8, 16, %s1258_s11, [#allocation5]  }
 0x477   :  { %1051 = dma.done.wait [#allocation5], 16  }
 0x478   :  { %1052 = vsyncadd [#allocation5], 4294967280 }
 0x479   :  { %891 = vsyncpa [#allocation4], 1 }
 0x47a   :  { %892 = vsyncpa [#allocation5], 1 }

</bundles_post_ra>
